<compile_context>
chip_gen: v7x
topology: tpu7x:2x2x1
jax: 0.10.0
libtpu: 0.0.40
codegen_flags: <defaults>
</compile_context>

<pallas_src>
import functools

import jax
import jax.numpy as jnp
from jax.experimental import pallas as pl
from jax.experimental.pallas import tpu as pltpu


def _round_up(x, m):
    return ((x + m - 1) // m) * m


def _cdiv(a, b):
    return -(-a // b)


def actor_kernel(obs_dim, act_dim, x_ref, w1_ref, b1_ref, w2_ref, b2_ref,
                 w3_ref, b3_ref, out_ref):
    # x: (Dp, TB) f32 -- rows [0, obs_dim) = obs^T, row obs_dim = act, rest 0.
    x = x_ref[...]

    # h1 = tanh(W1^T x + b1)   -> (H, TB).  W1^T has zero columns for the act /
    # padding rows, so they contribute nothing.
    h1 = jnp.tanh(
        jnp.dot(w1_ref[...], x, preferred_element_type=jnp.float32) + b1_ref[...])
    # h2 = tanh(W2^T h1 + b2)  -> (H, TB)
    h2 = jnp.tanh(
        jnp.dot(w2_ref[...], h1, preferred_element_type=jnp.float32) + b2_ref[...])
    # z = W3^T h2 + b3         -> (A_pad, TB); rows >= act_dim are zero padding.
    z = jnp.dot(w3_ref[...], h2, preferred_element_type=jnp.float32) + b3_ref[...]

    row = jax.lax.broadcasted_iota(jnp.int32, z.shape, 0)     # (A_pad, TB)
    valid = row < act_dim
    zm = jnp.where(valid, z, jnp.float32(-1e30))              # mask padded rows

    # Categorical(logits).log_prob(a) = logits[a] - logsumexp(logits)
    m = jnp.max(zm, axis=0, keepdims=True)                    # (1, TB)
    lse = m + jnp.log(jnp.sum(jnp.exp(zm - m), axis=0, keepdims=True))

    # Action indices were folded into sublane row `obs_dim` (exact small ints).
    act = x_ref[pl.ds(obs_dim, 1), :].astype(jnp.int32)       # (1, TB)
    picked = jnp.sum(jnp.where(row == act, zm, 0.0), axis=0, keepdims=True)
    logp = picked - lse                                       # (1, TB)

    # Output slab: rows [0, act_dim) = logits, row act_dim = logp_a, rest = 0.
    out = jnp.where(valid, z, 0.0)
    out_ref[...] = jnp.where(row == act_dim, logp, out)


def actor_forward(obs, act, params, *, block_b=2048):
    """Returns (logits, logp_a); logits parameterize the Categorical distribution."""
    w1, b1, w2, b2, w3, b3 = params          # w: (fan_in, fan_out), b: (1, fan_out)
    B, D = obs.shape
    H = w1.shape[1]
    A = w3.shape[1]

    Dp = _round_up(D + 1, 8)        # +1 sublane row carries the action index
    A_pad = _round_up(A + 1, 8)     # +1 sublane row carries logp_a

    # Feature-major (transposed) weights; zero-pad so act / pad rows are inert.
    w1t = jnp.zeros((H, Dp), jnp.float32).at[:, :D].set(w1.T)
    b1t = b1.reshape(H, 1).astype(jnp.float32)
    w2t = w2.T.astype(jnp.float32)
    b2t = b2.reshape(H, 1).astype(jnp.float32)
    w3t = jnp.zeros((A_pad, H), jnp.float32).at[:A, :].set(w3.T)
    b3t = jnp.zeros((A_pad, 1), jnp.float32).at[:A, 0].set(b3.reshape(-1))

    # Batch tiling: big tiles amortize the fixed per-grid-step cost; with the
    # transposed layout the double-buffered VMEM footprint is tiny (< 1 MiB at
    # TB=2048), well inside even v5e's 16 MiB scoped default.
    TB = min(block_b, _round_up(max(B, 1), 128))
    n_tiles = _cdiv(B, TB)
    if n_tiles > 1 and n_tiles % 2 == 1:
        # Even tile count lets ("parallel",) shard across both TCs on v7x;
        # rebalance TB so we don't just append an all-padding tile.
        n_tiles += 1
        TB = _round_up(_cdiv(B, n_tiles), 128)
        n_tiles = _cdiv(B, TB)
        if n_tiles % 2 == 1:
            n_tiles += 1
    Bp = n_tiles * TB
    grid = (n_tiles,)

    # Input slab (Dp, Bp): rows [0, D) = obs^T, row D = act (exact as f32),
    # remaining rows = 0.  Folding act in avoids a separate narrow DMA.
    # NOTE: out-of-range actions (act < 0 or >= act_dim) yield meaningless
    # logp; assert/clamp in the caller if needed.
    xin = jnp.zeros((Dp, Bp), jnp.float32)
    xin = xin.at[:D, :B].set(obs.astype(jnp.float32).T)
    xin = xin.at[D, :B].set(act.astype(jnp.float32))

    w_bytes = 4 * (w1t.size + b1t.size + w2t.size + b2t.size + w3t.size + b3t.size)
    flops = 2 * Bp * (Dp * H + H * H + H * A_pad)
    transcendentals = Bp * (2 * H + A_pad + 1)        # tanh x2, exp, log
    bytes_accessed = 4 * (Dp * Bp + A_pad * Bp) + w_bytes

    out = pl.pallas_call(
        functools.partial(actor_kernel, D, A),
        out_shape=jax.ShapeDtypeStruct((A_pad, Bp), jnp.float32),
        grid=grid,
        in_specs=[
            pl.BlockSpec((Dp, TB), lambda i: (0, i)),      # obs/act tile (pipelined)
            pl.BlockSpec((H, Dp), lambda i: (0, 0)),       # W1^T (VMEM-resident)
            pl.BlockSpec((H, 1), lambda i: (0, 0)),        # b1
            pl.BlockSpec((H, H), lambda i: (0, 0)),        # W2^T
            pl.BlockSpec((H, 1), lambda i: (0, 0)),        # b2
            pl.BlockSpec((A_pad, H), lambda i: (0, 0)),    # W3^T (row-padded)
            pl.BlockSpec((A_pad, 1), lambda i: (0, 0)),    # b3 (row-padded)
        ],
        out_specs=pl.BlockSpec((A_pad, TB), lambda i: (0, i)),
        compiler_params=pltpu.CompilerParams(
            dimension_semantics=("parallel",)),
        cost_estimate=pl.CostEstimate(
            flops=flops,
            transcendentals=transcendentals,
            bytes_accessed=bytes_accessed),
    )(xin, w1t, b1t, w2t, b2t, w3t, b3t)

    logits = out[:A, :B].T                 # (B, A)
    logp_a = out[A, :B]                    # (B,)
    return logits, logp_a


def init_params(key, obs_dim, act_dim, hidden=64):
    """Deterministic init mirroring nn.Linear default (uniform(+-1/sqrt(fan_in)))."""
    ks = jax.random.split(key, 6)

    def lin(kw, kb, fan_in, fan_out):
        bound = 1.0 / jnp.sqrt(jnp.float32(fan_in))
        w = jax.random.uniform(kw, (fan_in, fan_out), jnp.float32, -bound, bound)
        b = jax.random.uniform(kb, (1, fan_out), jnp.float32, -bound, bound)
        return w, b

    w1, b1 = lin(ks[0], ks[1], obs_dim, hidden)
    w2, b2 = lin(ks[2], ks[3], hidden, hidden)
    w3, b3 = lin(ks[4], ks[5], hidden, act_dim)
    return (w1, b1, w2, b2, w3, b3)


def actor_forward_ref(obs, act, params):
    w1, b1, w2, b2, w3, b3 = params
    h1 = jnp.tanh(obs @ w1 + b1)
    h2 = jnp.tanh(h1 @ w2 + b2)
    logits = h2 @ w3 + b3
    lse = jax.nn.logsumexp(logits, axis=-1)
    logp = jnp.take_along_axis(logits, act.reshape(-1, 1), axis=-1)[:, 0] - lse
    return logits, logp


if __name__ == "__main__":
    key = jax.random.PRNGKey(0)
    kp, ko, ka = jax.random.split(key, 3)

    B, OBS_DIM, ACT_DIM = 8, 16, 8
    params = init_params(kp, OBS_DIM, ACT_DIM)
    obs = jax.random.normal(ko, (B, OBS_DIM), jnp.float32)
    act = jax.random.randint(ka, (B,), 0, ACT_DIM, jnp.int32)

    logits, logp_a = actor_forward(obs, act, params)
    logits = jax.block_until_ready(logits)
    logp_a = jax.block_until_ready(logp_a)

    ref_logits, ref_logp = actor_forward_ref(obs, act, params)
    assert jnp.allclose(logits, ref_logits, atol=1e-5, rtol=1e-5)
    assert jnp.allclose(logp_a, ref_logp, atol=1e-5, rtol=1e-5)

    print("KERNEL_OK")
</pallas_src>

<mosaic_0001>
module attributes {stable_mosaic.version = 11 : i64} {
  func.func @actor_kernel(%arg0: i32, %arg1: memref<24x128xf32, #tpu.memory_space<vmem>>, %arg2: memref<64x24xf32, #tpu.memory_space<vmem>>, %arg3: memref<64x1xf32, #tpu.memory_space<vmem>>, %arg4: memref<64x64xf32, #tpu.memory_space<vmem>>, %arg5: memref<64x1xf32, #tpu.memory_space<vmem>>, %arg6: memref<16x64xf32, #tpu.memory_space<vmem>>, %arg7: memref<16x1xf32, #tpu.memory_space<vmem>>, %arg8: memref<16x128xf32, #tpu.memory_space<vmem>>) attributes {dimension_semantics = [#tpu.dimension_semantics<parallel>], iteration_bounds = array<i64: 1>, scalar_prefetch = 0 : i64, scratch_operands = 0 : i64, tpu.core_type = #tpu.core_type<tc>, window_params = [{transform_indices = @transform_0, window_bounds = array<i64: 24, 128>}, {pipeline_mode = #tpu.pipeline_mode<synchronous>, transform_indices = @transform_1, window_bounds = array<i64: 64, 24>}, {pipeline_mode = #tpu.pipeline_mode<synchronous>, transform_indices = @transform_2, window_bounds = array<i64: 64, 1>}, {pipeline_mode = #tpu.pipeline_mode<synchronous>, transform_indices = @transform_3, window_bounds = array<i64: 64, 64>}, {pipeline_mode = #tpu.pipeline_mode<synchronous>, transform_indices = @transform_4, window_bounds = array<i64: 64, 1>}, {pipeline_mode = #tpu.pipeline_mode<synchronous>, transform_indices = @transform_5, window_bounds = array<i64: 16, 64>}, {pipeline_mode = #tpu.pipeline_mode<synchronous>, transform_indices = @transform_6, window_bounds = array<i64: 16, 1>}, {transform_indices = @transform_7, window_bounds = array<i64: 16, 128>}]} {
    %c0 = arith.constant 0 : index
    %c0_0 = arith.constant 0 : index
    %0 = vector.load %arg1[%c0, %c0_0] : memref<24x128xf32, #tpu.memory_space<vmem>>, vector<24x128xf32>
    %c0_1 = arith.constant 0 : index
    %c0_2 = arith.constant 0 : index
    %1 = vector.load %arg2[%c0_1, %c0_2] : memref<64x24xf32, #tpu.memory_space<vmem>>, vector<64x24xf32>
    %cst = arith.constant dense<0.000000e+00> : vector<64x128xf32>
    %2 = tpu.matmul %1, %0, %cst {dimension_numbers = #tpu.dot_dimension_numbers<[1], [0], [0], [1], [0, 0, 1, 1], [], []>} : vector<64x24xf32>, vector<24x128xf32>, vector<64x128xf32> -> vector<64x128xf32>
    %c0_3 = arith.constant 0 : index
    %c0_4 = arith.constant 0 : index
    %3 = vector.load %arg3[%c0_3, %c0_4] : memref<64x1xf32, #tpu.memory_space<vmem>>, vector<64x1xf32>
    %4 = vector.broadcast %3 : vector<64x1xf32> to vector<64x128xf32>
    %5 = arith.addf %2, %4 : vector<64x128xf32>
    %6 = math.tanh %5 : vector<64x128xf32>
    %c0_5 = arith.constant 0 : index
    %c0_6 = arith.constant 0 : index
    %7 = vector.load %arg4[%c0_5, %c0_6] : memref<64x64xf32, #tpu.memory_space<vmem>>, vector<64x64xf32>
    %cst_7 = arith.constant dense<0.000000e+00> : vector<64x128xf32>
    %8 = tpu.matmul %7, %6, %cst_7 {dimension_numbers = #tpu.dot_dimension_numbers<[1], [0], [0], [1], [0, 0, 1, 1], [], []>} : vector<64x64xf32>, vector<64x128xf32>, vector<64x128xf32> -> vector<64x128xf32>
    %c0_8 = arith.constant 0 : index
    %c0_9 = arith.constant 0 : index
    %9 = vector.load %arg5[%c0_8, %c0_9] : memref<64x1xf32, #tpu.memory_space<vmem>>, vector<64x1xf32>
    %10 = vector.broadcast %9 : vector<64x1xf32> to vector<64x128xf32>
    %11 = arith.addf %8, %10 : vector<64x128xf32>
    %12 = math.tanh %11 : vector<64x128xf32>
    %c0_10 = arith.constant 0 : index
    %c0_11 = arith.constant 0 : index
    %13 = vector.load %arg6[%c0_10, %c0_11] : memref<16x64xf32, #tpu.memory_space<vmem>>, vector<16x64xf32>
    %cst_12 = arith.constant dense<0.000000e+00> : vector<16x128xf32>
    %14 = tpu.matmul %13, %12, %cst_12 {dimension_numbers = #tpu.dot_dimension_numbers<[1], [0], [0], [1], [0, 0, 1, 1], [], []>} : vector<16x64xf32>, vector<64x128xf32>, vector<16x128xf32> -> vector<16x128xf32>
    %c0_13 = arith.constant 0 : index
    %c0_14 = arith.constant 0 : index
    %15 = vector.load %arg7[%c0_13, %c0_14] : memref<16x1xf32, #tpu.memory_space<vmem>>, vector<16x1xf32>
    %16 = vector.broadcast %15 : vector<16x1xf32> to vector<16x128xf32>
    %17 = arith.addf %14, %16 : vector<16x128xf32>
    %18 = tpu.iota {dimensions = array<i32: 0>} : vector<16x128xi32>
    %c8_i32 = arith.constant 8 : i32
    %19 = vector.broadcast %c8_i32 : i32 to vector<16x128xi32>
    %20 = arith.cmpi slt, %18, %19 : vector<16x128xi32>
    %cst_15 = arith.constant -1.000000e+30 : f32
    %21 = vector.broadcast %cst_15 : f32 to vector<16x128xf32>
    %22 = arith.select %20, %17, %21 : vector<16x128xi1>, vector<16x128xf32>
    %cst_16 = arith.constant dense<0xFF800000> : vector<128xf32>
    %23 = vector.multi_reduction <maximumf>, %22, %cst_16 [0] : vector<16x128xf32> to vector<128xf32>
    %24 = vector.shape_cast %23 : vector<128xf32> to vector<1x128xf32>
    %25 = vector.broadcast %24 : vector<1x128xf32> to vector<16x128xf32>
    %26 = arith.subf %22, %25 : vector<16x128xf32>
    %27 = math.exp %26 : vector<16x128xf32>
    %cst_17 = arith.constant dense<0.000000e+00> : vector<128xf32>
    %28 = vector.multi_reduction <add>, %27, %cst_17 [0] : vector<16x128xf32> to vector<128xf32>
    %29 = vector.shape_cast %28 : vector<128xf32> to vector<1x128xf32>
    %30 = math.log %29 : vector<1x128xf32>
    %31 = arith.addf %24, %30 : vector<1x128xf32>
    %c16 = arith.constant 16 : index
    %c0_18 = arith.constant 0 : index
    %32 = vector.load %arg1[%c16, %c0_18] : memref<24x128xf32, #tpu.memory_space<vmem>>, vector<1x128xf32>
    %33 = arith.fptosi %32 : vector<1x128xf32> to vector<1x128xi32>
    %34 = vector.broadcast %33 : vector<1x128xi32> to vector<16x128xi32>
    %35 = arith.cmpi eq, %18, %34 : vector<16x128xi32>
    %cst_19 = arith.constant 0.000000e+00 : f32
    %36 = vector.broadcast %cst_19 : f32 to vector<16x128xf32>
    %37 = arith.select %35, %22, %36 : vector<16x128xi1>, vector<16x128xf32>
    %cst_20 = arith.constant dense<0.000000e+00> : vector<128xf32>
    %38 = vector.multi_reduction <add>, %37, %cst_20 [0] : vector<16x128xf32> to vector<128xf32>
    %39 = vector.shape_cast %38 : vector<128xf32> to vector<1x128xf32>
    %40 = arith.subf %39, %31 : vector<1x128xf32>
    %cst_21 = arith.constant 0.000000e+00 : f32
    %41 = vector.broadcast %cst_21 : f32 to vector<16x128xf32>
    %42 = arith.select %20, %17, %41 : vector<16x128xi1>, vector<16x128xf32>
    %c8_i32_22 = arith.constant 8 : i32
    %43 = vector.broadcast %c8_i32_22 : i32 to vector<16x128xi32>
    %44 = arith.cmpi eq, %18, %43 : vector<16x128xi32>
    %45 = vector.shape_cast %40 : vector<1x128xf32> to vector<1x128xf32>
    %46 = vector.broadcast %45 : vector<1x128xf32> to vector<16x128xf32>
    %47 = arith.select %44, %46, %42 : vector<16x128xi1>, vector<16x128xf32>
    %c0_23 = arith.constant 0 : index
    %c0_24 = arith.constant 0 : index
    %48 = vector.load %arg8[%c0_23, %c0_24] : memref<16x128xf32, #tpu.memory_space<vmem>>, vector<16x128xf32>
    tpu.vector_store %arg8[%c0_23, %c0_24], %47 {strides = array<i32>} : memref<16x128xf32, #tpu.memory_space<vmem>>, vector<16x128xf32>,
    return
  }
  func.func @transform_0(%arg0: i32) -> (i32, i32) {
    %c0_i32 = arith.constant 0 : i32
    %c0_i32_0 = arith.constant 0 : i32
    return %c0_i32, %arg0 : i32, i32
  }
  func.func @transform_1(%arg0: i32) -> (i32, i32) {
    %c0_i32 = arith.constant 0 : i32
    %c0_i32_0 = arith.constant 0 : i32
    %c0_i32_1 = arith.constant 0 : i32
    return %c0_i32, %c0_i32_0 : i32, i32
  }
  func.func @transform_2(%arg0: i32) -> (i32, i32) {
    %c0_i32 = arith.constant 0 : i32
    %c0_i32_0 = arith.constant 0 : i32
    %c0_i32_1 = arith.constant 0 : i32
    return %c0_i32, %c0_i32_0 : i32, i32
  }
  func.func @transform_3(%arg0: i32) -> (i32, i32) {
    %c0_i32 = arith.constant 0 : i32
    %c0_i32_0 = arith.constant 0 : i32
    %c0_i32_1 = arith.constant 0 : i32
    return %c0_i32, %c0_i32_0 : i32, i32
  }
  func.func @transform_4(%arg0: i32) -> (i32, i32) {
    %c0_i32 = arith.constant 0 : i32
    %c0_i32_0 = arith.constant 0 : i32
    %c0_i32_1 = arith.constant 0 : i32
    return %c0_i32, %c0_i32_0 : i32, i32
  }
  func.func @transform_5(%arg0: i32) -> (i32, i32) {
    %c0_i32 = arith.constant 0 : i32
    %c0_i32_0 = arith.constant 0 : i32
    %c0_i32_1 = arith.constant 0 : i32
    return %c0_i32, %c0_i32_0 : i32, i32
  }
  func.func @transform_6(%arg0: i32) -> (i32, i32) {
    %c0_i32 = arith.constant 0 : i32
    %c0_i32_0 = arith.constant 0 : i32
    %c0_i32_1 = arith.constant 0 : i32
    return %c0_i32, %c0_i32_0 : i32, i32
  }
  func.func @transform_7(%arg0: i32) -> (i32, i32) {
    %c0_i32 = arith.constant 0 : i32
    %c0_i32_0 = arith.constant 0 : i32
    return %c0_i32, %arg0 : i32, i32
  }
}

</mosaic_0001>

<bundles_post_ra>
// kernel: tpu_custom_call.1
= control target key start
LH: loop header
LB: loop body
LE: loop exit
PB: predicated region body
PF: predicated region fallthrough
CT: control target
= control target key end

     0   :  { %vm86_vm0 = vcmask 195584   ;;  %v812_v4 = vmov 0   ;;  %s1004_s0 = inlined_call_operand.vmem [shape: f32[24,128], index: 0, kind: input, shape index: {}]   ;;  %s1005_s1 = inlined_call_operand.vmem [shape: f32[64,24], index: 1, kind: input, shape index: {}]   ;;  %s1006_s2 = inlined_call_operand.vmem [shape: f32[64,1], index: 2, kind: input, shape index: {}]   ;;  %s1007_s3 = inlined_call_operand.vmem [shape: f32[64,64], index: 3, kind: input, shape index: {}]   ;;  %s1008_s4 = inlined_call_operand.vmem [shape: f32[64,1], index: 4, kind: input, shape index: {}]   ;;  %s1009_s5 = inlined_call_operand.vmem [shape: f32[16,64], index: 5, kind: input, shape index: {}]   ;;  %s1010_s6 = inlined_call_operand.vmem [shape: f32[16,1], index: 6, kind: input, shape index: {}]   ;;  %s1011_s7 = inlined_call_operand.hbm [shape: f32[16,128], index: 7, kind: output, shape index: {}]  }
   0x1   :  { %v27_v0 = vld [vmem:[%s1004_s0] sm:$0xff]  ;;  %v28_v1 = vld [vmem:[%s1004_s0 + $0x8] sm:$0xff]  ;;  %748 = vset.pattern.permute.xlu0 %v812_v4  ;;  %749 = vset.pattern.permute.xlu1 %v812_v4  ;;  %v29_v5 = vld [vmem:[%s1004_s0 + $0x10] sm:$0xff] }
   0x2   :  { %v705_v2 = vpack.c.bf16 %v28_v1, %v27_v0  ;;  %v30_v3 = vld [vmem:[%s1005_s1] sm:$0xff]  ;;  %v40_v7 = vld [vmem:[%s1006_s2 + $0x10] sm:$0xff]  ;;  %v39_v8 = vld [vmem:[%s1006_s2 + $0x8] sm:$0xff] }
   0x3   :  { %646 = vmatprep.mubr.msk.f32.mxu0 %vm86_vm0, %v30_v3  ;;  %v38_v6 = vld [vmem:[%s1006_s2] sm:$0xff]  ;;  %58 = vperm.xlu1 %749, %v40_v7   ;;  %v31_v9 = vld [vmem:[%s1005_s1 + $0x8] sm:$0xff]  ;;  %v41_v10 = vld [vmem:[%s1006_s2 + $0x18] sm:$0xff] }
   0x4   :  { %706 = vmatprep.subr.bf16.mxu0 %v705_v2  ;;  %48 = vperm.xlu0 %748, %v38_v6   ;;  %v32_v11 = vld [vmem:[%s1005_s1 + $0x10] sm:$0xff]  ;;  %v42_v12 = vld [vmem:[%s1006_s2 + $0x20] sm:$0xff] }
   0x5   :  { %708 = vmatpush3.bf16.msra.mxu0 %v705_v2 }
   0x6   :  { %644 = vmatprep.subr.mxu0 %v29_v5 }
   0x7   :  { %63 = vperm.xlu1 %749, %v41_v10  }
   0x8   :  { %53 = vperm.xlu0 %748, %v39_v8  }
   0x9   :  { %645 = vmatpush3.msra.mxu0 %v29_v5 }
   0xa   :  { %647 = vmatmul.mubr.msk.f32.vlgmr.msra.gmra.mrb[0].mxu0 %vm86_vm0, %v31_v9 }
   0xb   :  { %12 = vsyncpa [#allocation3], 0  ;;  %649 = vmatprep.mubr.msk.f32.mxu0 %vm86_vm0, %v32_v11  ;;  %v33_v13 = vld [vmem:[%s1005_s1 + $0x18] sm:$0xff]  ;;  %v43_v14 = vld [vmem:[%s1006_s2 + $0x28] sm:$0xff]  ;;  %vm280_vm1 = vcmask 523264  }
   0xc   :  { %v34_v15 = vld [vmem:[%s1005_s1 + $0x20] sm:$0xff]  ;;  %68 = vperm.xlu0 %748, %v42_v12   ;;  %v44_v16 = vld [vmem:[%s1006_s2 + $0x30] sm:$0xff]  ;;  %73 = vperm.xlu1 %749, %v43_v14   ;;  %v35_v17 = vld [vmem:[%s1005_s1 + $0x28] sm:$0xff] }
   0xd   :  { %v45_v18 = vld [vmem:[%s1006_s2 + $0x38] sm:$0xff]  ;;  %v36_v19 = vld [vmem:[%s1005_s1 + $0x30] sm:$0xff]  ;;  %v232_v20 = vld [vmem:[%s1008_s4] sm:$0xff] }
   0xe   :  { %650 = vmatmul.mubr.msk.f32.gmra.mrb[2].mxu0 %vm86_vm0, %v33_v13  ;;  %v37_v21 = vld [vmem:[%s1005_s1 + $0x38] sm:$0xff]  ;;  %v233_v22 = vld [vmem:[%s1008_s4 + $0x8] sm:$0xff]  ;;  %v234_v23 = vld [vmem:[%s1008_s4 + $0x10] sm:$0xff] }
   0xf   :  { %652 = vmatprep.mubr.msk.f32.mxu0 %vm86_vm0, %v34_v15  ;;  %v235_v24 = vld [vmem:[%s1008_s4 + $0x18] sm:$0xff]  ;;  %v236_v25 = vld [vmem:[%s1008_s4 + $0x20] sm:$0xff]  ;;  %v237_v26 = vld [vmem:[%s1008_s4 + $0x28] sm:$0xff] }
  0x10   :  { %78 = vperm.xlu0 %748, %v44_v16   ;;  %83 = vperm.xlu1 %749, %v45_v18   ;;  %v238_v27 = vld [vmem:[%s1008_s4 + $0x30] sm:$0xff]  ;;  %v239_v28 = vld [vmem:[%s1008_s4 + $0x38] sm:$0xff]  ;;  %v420_v29 = vld [vmem:[%s1010_s6] sm:$0xff] }
  0x11   :  { %v224_v30 = vld [vmem:[%s1007_s3] sm:$0xff]  ;;  %v225_v3 = vld [vmem:[%s1007_s3 + $0x8] sm:$0xff]  ;;  %v226_v4 = vld [vmem:[%s1007_s3 + $0x10] sm:$0xff] }
  0x12   :  { %653 = vmatmul.mubr.msk.f32.gmra.mrb[4].mxu0 %vm86_vm0, %v35_v17  ;;  %674 = vmatprep.mubr.msk.f32.mxu1 %vm280_vm1, %v224_v30  ;;  %v227_v5 = vld [vmem:[%s1007_s3 + $0x18] sm:$0xff]  ;;  %v228_v6 = vld [vmem:[%s1007_s3 + $0x20] sm:$0xff]  ;;  %v229_v7 = vld [vmem:[%s1007_s3 + $0x28] sm:$0xff] }
  0x13   :  { %655 = vmatprep.mubr.msk.f32.mxu0 %vm86_vm0, %v36_v19  ;;  %v230_v8 = vld [vmem:[%s1007_s3 + $0x30] sm:$0xff]  ;;  %v231_v9 = vld [vmem:[%s1007_s3 + $0x38] sm:$0xff]  ;;  %v418_v10 = vld [vmem:[%s1009_s5] sm:$0xff] }
  0x14   :  { %242 = vperm.xlu0 %748, %v232_v20   ;;  %247 = vperm.xlu1 %749, %v233_v22  }
  0x16   :  { %656 = vmatmul.mubr.msk.f32.gmra.mrb[6].mxu0 %vm86_vm0, %v37_v21 }
  0x17   :  { %702 = vmatprep.mubr.msk.f32.mxu0 %vm280_vm1, %v418_v10 }
  0x18   :  { %252 = vperm.xlu0 %748, %v234_v23   ;;  %257 = vperm.xlu1 %749, %v235_v24  }
  0x1c   :  { %262 = vperm.xlu0 %748, %v236_v25   ;;  %267 = vperm.xlu1 %749, %v237_v26  }
  0x20   :  { %272 = vperm.xlu0 %748, %v238_v27   ;;  %277 = vperm.xlu1 %749, %v239_v28  }
  0x24   :  { %424 = vperm.xlu0 %748, %v420_v29  }
  0x82   :  { %v59_v32 = vpop.permute.xlu1 %58 }
  0x83   :  { %v49_v31 = vpop.permute.xlu0 %48 }
  0x86   :  { %v64_v34 = vpop.permute.xlu1 %63 }
  0x87   :  { %v54_v33 = vpop.permute.xlu0 %53 }
  0x8b   :  { %v74_v42 = vpop.permute.xlu1 %73  ;;  %v69_v44 = vpop.permute.xlu0 %68 }
  0x8f   :  { %v84_v49 = vpop.permute.xlu1 %83  ;;  %v79_v52 = vpop.permute.xlu0 %78 }
  0x93   :  { %v248_v11 = vpop.permute.xlu1 %247  ;;  %v243_v12 = vpop.permute.xlu0 %242 }
  0x97   :  { %v258_v13 = vpop.permute.xlu1 %257  ;;  %v253_v15 = vpop.permute.xlu0 %252 }
  0x9b   :  { %v268_v22 = vpop.permute.xlu1 %267  ;;  %v263_v24 = vpop.permute.xlu0 %262 }
  0x9f   :  { %v278_v29 = vpop.permute.xlu1 %277 }
  0xdd   :  { %v648_v35 = vpop.f32.mrb[0].mxu0 }
  0xde   :  { %v183_v36 = vadd.f32 %v648_v35, %v54_v33  ;;  %v177_v37 = vpop.f32.mrb[1].mxu0 }
  0xdf   :  { %v178_v38 = vadd.f32 %v177_v37, %v49_v31 }
  0xe0   :  { %750 = vtanh.f32 %v183_v36 }
  0xe1   :  { %752 = vtanh.f32 %v178_v38  ;;  %v651_v39 = vpop.f32.mrb[2].mxu0 }
  0xe2   :  { %v193_v40 = vadd.f32 %v651_v39, %v64_v34  ;;  %v187_v41 = vpop.f32.mrb[3].mxu0 }
  0xe3   :  { %v188_v43 = vadd.f32 %v187_v41, %v59_v32  ;;  %v273_v32 = vpop.permute.xlu0 %272 }
  0xe4   :  { %754 = vtanh.f32 %v193_v40 }
  0xe5   :  { %756 = vtanh.f32 %v188_v43  ;;  %v654_v45 = vpop.f32.mrb[4].mxu0 }
  0xe6   :  { %v203_v46 = vadd.f32 %v654_v45, %v74_v42  ;;  %v197_v47 = vpop.f32.mrb[5].mxu0 }
  0xe7   :  { %v198_v48 = vadd.f32 %v197_v47, %v69_v44  ;;  %v419_v47 = vld [vmem:[%s1009_s5 + $0x8] sm:$0xff] }
  0xe8   :  { %758 = vtanh.f32 %v203_v46 }
  0xe9   :  { %760 = vtanh.f32 %v198_v48  ;;  %v657_v50 = vpop.f32.mrb[6].mxu0 }
  0xea   :  { %v751_v51 = vpop.eup %750  ;;  %v213_v53 = vadd.f32 %v657_v50, %v84_v49  ;;  %v207_v54 = vpop.f32.mrb[7].mxu0 }
  0xeb   :  { %v753_v55 = vpop.eup %752  ;;  %v208_v56 = vadd.f32 %v207_v54, %v79_v52  ;;  %v425_v49 = vpop.permute.xlu0 %424 }
  0xec   :  { %762 = vtanh.f32 %v213_v53  ;;  %v709_v57 = vpack.c.bf16 %v751_v51, %v753_v55 }
  0xed   :  { %764 = vtanh.f32 %v208_v56 }
  0xee   :  { %v755_v58 = vpop.eup %754  ;;  %710 = vmatprep.subr.bf16.mxu1 %v709_v57 }
  0xef   :  { %v757_v59 = vpop.eup %756  ;;  %712 = vmatpush3.bf16.msra.mxu1 %v709_v57 }
  0xf0   :  { %v713_v60 = vpack.c.bf16 %v755_v58, %v757_v59  ;;  %v513_v58 = vlaneseq }
  0xf2   :  { %v759_v61 = vpop.eup %758  ;;  %714 = vmatprep.subr.bf16.mxu1 %v713_v60 }
  0xf3   :  { %v761_v62 = vpop.eup %760  ;;  %716 = vmatpush3.bf16.msra.mxu1 %v713_v60  ;;  %v543_v60 = vld [vmem:[%s1004_s0 + $0x10] sm:$0x1]  ;;  %s814_s0 = smov [#allocation2]  }
  0xf4   :  { %v717_v63 = vpack.c.bf16 %v759_v61, %v761_v62  ;;  %s574_s5 = sshll.u32 %s814_s0, 4  ;;  %s575_s5 = int_to_ptr.vmem [resolvable:$true] %s574_s5 }
  0xf5   :  { %s788_s26 = scalar_lea.vmem %s575_s5, 256  ;;  %p793_p1 = scmp.lt.s32.totalorder %s575_s5, %s575_s5 }
  0xf6   :  { %v763_v0 = vpop.eup %762  ;;  %718 = vmatprep.subr.bf16.mxu1 %v717_v63  ;;  %p789_p0 = scmp.ne.s32.totalorder %s575_s5, %s788_s26  ;;  %p794_p2 = scmp.lt.s32.totalorder %s788_s26, %s788_s26 }
  0xf7   :  { %v765_v1 = vpop.eup %764  ;;  %720 = vmatpush3.bf16.msra.mxu1 %v717_v63  ;;  %v514_v63 = vshrl.u32 %v513_v58, 7 }
  0xf8   :  { %v721_v2 = vpack.c.bf16 %v763_v0, %v765_v1  ;;  %v741_v0 = vtrunc.f32 %v543_v60  ;;  %p795_p3 = por %p794_p2, %p793_p1 }
  0xfa   :  { %722 = vmatprep.subr.bf16.mxu1 %v721_v2  ;;  %p796_p4 = pnand %p795_p3, %p789_p0 }
  0xfb   :  { %724 = vmatpush3.bf16.msra.mxu1 %v721_v2 }
  0xfe   :  { %675 = vmatmul.mubr.msk.f32.vlgmr.msra.gmra.mrb[0].mxu1 %vm280_vm1, %v225_v3  ;;  %v742_v3 = vcvt.f32.s32 %v741_v0 }
  0xff   :  { %677 = vmatprep.mubr.msk.f32.mxu1 %vm280_vm1, %v226_v4  ;;  %v547_v4 = vsub.s32 0, %v514_v63 }
 0x102   :  { %678 = vmatmul.mubr.msk.f32.gmra.mrb[2].mxu1 %vm280_vm1, %v227_v5  ;;  %v515_v5 = vadd.s32 8, %v514_v63 }
 0x103   :  { %680 = vmatprep.mubr.msk.f32.mxu1 %vm280_vm1, %v228_v6  ;;  %v548_v6 = vrot.slane %v742_v3, %v547_v4 }
 0x104   :  { %vm564_vm4 = vcmp.eq.s32.totalorder %v515_v5, 8 }
 0x105   :  { %vm549_vm2 = vcmp.eq.s32.totalorder %v514_v63, %v548_v6  ;;  %vm550_vm3 = vcmp.eq.s32.totalorder %v515_v5, %v548_v6 }
 0x106   :  { %681 = vmatmul.mubr.msk.f32.gmra.mrb[4].mxu1 %vm280_vm1, %v229_v7 }
 0x107   :  { %683 = vmatprep.mubr.msk.f32.mxu1 %vm280_vm1, %v230_v8 }
 0x10a   :  { %684 = vmatmul.mubr.msk.f32.gmra.mrb[6].mxu1 %vm280_vm1, %v231_v9 }
 0x1d1   :  { %v676_v14 = vpop.f32.mrb[0].mxu1 }
 0x1d2   :  { %v377_v16 = vadd.f32 %v676_v14, %v248_v11  ;;  %v371_v17 = vpop.f32.mrb[1].mxu1  ;;  %v813_v11 = vmov 0.0  }
 0x1d3   :  { %v372_v18 = vadd.f32 %v371_v17, %v243_v12  ;;  %v552_v12 = vsel %vm550_vm3, -1e+30, %v813_v11 }
 0x1d4   :  { %766 = vtanh.f32 %v377_v16 }
 0x1d5   :  { %768 = vtanh.f32 %v372_v18  ;;  %v679_v19 = vpop.f32.mrb[2].mxu1 }
 0x1d6   :  { %v387_v20 = vadd.f32 %v679_v19, %v258_v13  ;;  %v381_v21 = vpop.f32.mrb[3].mxu1 }
 0x1d7   :  { %v382_v23 = vadd.f32 %v381_v21, %v253_v15 }
 0x1d8   :  { %770 = vtanh.f32 %v387_v20 }
 0x1d9   :  { %772 = vtanh.f32 %v382_v23  ;;  %v682_v25 = vpop.f32.mrb[4].mxu1 }
 0x1da   :  { %v397_v26 = vadd.f32 %v682_v25, %v268_v22  ;;  %v391_v27 = vpop.f32.mrb[5].mxu1 }
 0x1db   :  { %v392_v28 = vadd.f32 %v391_v27, %v263_v24 }
 0x1dc   :  { %774 = vtanh.f32 %v397_v26 }
 0x1dd   :  { %776 = vtanh.f32 %v392_v28  ;;  %v685_v30 = vpop.f32.mrb[6].mxu1 }
 0x1de   :  { %v767_v31 = vpop.eup %766  ;;  %v407_v33 = vadd.f32 %v685_v30, %v278_v29  ;;  %v401_v34 = vpop.f32.mrb[7].mxu1 }
 0x1df   :  { %v769_v35 = vpop.eup %768  ;;  %v402_v36 = vadd.f32 %v401_v34, %v273_v32 }
 0x1e0   :  { %778 = vtanh.f32 %v407_v33  ;;  %v725_v37 = vpack.c.bf16 %v767_v31, %v769_v35 }
 0x1e1   :  { %780 = vtanh.f32 %v402_v36 }
 0x1e2   :  { %v771_v38 = vpop.eup %770  ;;  %726 = vmatprep.subr.bf16.mxu0 %v725_v37 }
 0x1e3   :  { %v773_v39 = vpop.eup %772  ;;  %728 = vmatpush3.bf16.msra.mxu0 %v725_v37 }
 0x1e4   :  { %v729_v40 = vpack.c.bf16 %v771_v38, %v773_v39 }
 0x1e6   :  { %v775_v41 = vpop.eup %774  ;;  %730 = vmatprep.subr.bf16.mxu0 %v729_v40 }
 0x1e7   :  { %v777_v42 = vpop.eup %776  ;;  %732 = vmatpush3.bf16.msra.mxu0 %v729_v40 }
 0x1e8   :  { %v733_v43 = vpack.c.bf16 %v775_v41, %v777_v42 }
 0x1ea   :  { %v779_v44 = vpop.eup %778  ;;  %734 = vmatprep.subr.bf16.mxu0 %v733_v43 }
 0x1eb   :  { %v781_v45 = vpop.eup %780  ;;  %736 = vmatpush3.bf16.msra.mxu0 %v733_v43 }
 0x1ec   :  { %v737_v46 = vpack.c.bf16 %v779_v44, %v781_v45 }
 0x1ee   :  { %738 = vmatprep.subr.bf16.mxu0 %v737_v46 }
 0x1ef   :  { %740 = vmatpush3.bf16.msra.mxu0 %v737_v46 }
 0x1f2   :  { %703 = vmatmul.mubr.msk.f32.vlgmr.msra.gmra.mrb[8].mxu0 %vm280_vm1, %v419_v47 }
 0x2c5   :  { %v704_v48 = vpop.f32.mrb[8].mxu0 }
 0x2c6   :  { %v504_v50 = vpop.f32.mrb[9].mxu0 }
 0x2c7   :  { %v505_v51 = vadd.f32 %v504_v50, %v425_v49 }
 0x2c9   :  { %v520_v52 = vmax.f32 %v505_v51, -1e+30  ;;  %567 = vst [vmem:[#allocation2] sm:$0xff] %v505_v51  ;;  %v551_v10 = vsel %vm549_vm2, %v505_v51, 0.0 }
 0x2ca   :  { %v553_v14 = vadd.f32 %v552_v12, %v551_v10 }
 0x2cb   :  { %v521_v53 = vrot.slane %v520_v52, 4 }
 0x2cc   :  { %v554_v17 = vrot.slane %v553_v14, 4 }
 0x2cd   :  { %v522_v54 = vmax.f32 %v520_v52, %v521_v53 }
 0x2ce   :  { %v555_v20 = vadd.f32 %v554_v17, %v553_v14 }
 0x2cf   :  { %v523_v55 = vrot.slane %v522_v54, 2 }
 0x2d0   :  { %v556_v22 = vrot.slane %v555_v20, 2 }
 0x2d1   :  { %v524_v56 = vmax.f32 %v522_v54, %v523_v55 }
 0x2d2   :  { %v557_v23 = vadd.f32 %v556_v22, %v555_v20 }
 0x2d3   :  { %v525_v57 = vrot.slane %v524_v56, 1 }
 0x2d4   :  { %v558_v24 = vrot.slane %v557_v23, 1 }
 0x2d5   :  { %v526_v59 = vmax.f32 %v524_v56, %v525_v57 }
 0x2d6   :  { %v559_v28 = vadd.f32 %v558_v24, %v557_v23 }
 0x2d7   :  { %v527_v61 = vsub.f32 %v505_v51, %v526_v59  ;;  %v528_v62 = vsub.f32 -1e+30, %v526_v59 }
 0x2d9   :  { %v529_v1 = vmul.f32 1.442695, %v527_v61  ;;  %v531_v2 = vmul.f32 1.442695, %v528_v62 }
 0x2db   :  { %782 = vpow2.f32 %v529_v1 }
 0x2dc   :  { %784 = vpow2.f32 %v531_v2 }
 0x2e5   :  { %v783_v7 = vpop.eup %782 }
 0x2e6   :  { %v785_v8 = vpop.eup %784 }
 0x2e7   :  { %v533_v9 = vadd.f32 %v785_v8, %v783_v7 }
 0x2e9   :  { %v534_v13 = vrot.slane %v533_v9, 4 }
 0x2eb   :  { %v535_v15 = vadd.f32 %v534_v13, %v533_v9 }
 0x2ed   :  { %v536_v16 = vrot.slane %v535_v15, 2 }
 0x2ef   :  { %v537_v18 = vadd.f32 %v536_v16, %v535_v15 }
 0x2f1   :  { %v538_v19 = vrot.slane %v537_v18, 1 }
 0x2f3   :  { %v539_v21 = vadd.f32 %v538_v19, %v537_v18 }
 0x2f5   :  { %786 = vlog2.f32 %v539_v21 }
 0x2ff   :  { %v787_v25 = vpop.eup %786 }
 0x300   :  { %v541_v26 = vmul.f32 0.6931472, %v787_v25 }
 0x302   :  { %v542_v27 = vadd.f32 %v541_v26, %v526_v59 }
 0x304   :  { %v560_v29 = vsub.f32 %v559_v28, %v542_v27 }
 0x306   :  { %v566_v30 = vsel %vm564_vm4, %v560_v29, 0.0 }
 0x307   :  { %568 = vst [vmem:[#allocation2 + $0x8] sm:$0xff] %v566_v30 }
 0x308   :  { %799 = shalt.err (!%p796_p4)
}
 0x309   :  { %s800_s29 = scalar_lea.hbm %s1011_s7, 256 }
 0x30a   :  { %p801_p5 = scmp.ne.s32.totalorder %s1011_s7, %s800_s29  ;;  %p804_p6 = scmp.lt.u32.totalorder %s800_s29, %s1011_s7 }
 0x30c   :  { %p806_p7 = pnand %p804_p6, %p801_p5 }
 0x30e   :  { %809 = shalt.err (!%p806_p7)
}
 0x30f   :  { %s815_s4 = smov 128   ;;  %s816_s6 = smov 8  }
 0x310   :  { %580 = dma.vmem_to_hbm [thread:$0]  %s575_s5, 256, %s1011_s7, [#allocation3], %s815_s4, %s815_s4, %s816_s6  }
 0x311   :  { %810 = dma.done.wait [#allocation3], 256  }
 0x312   :  { %811 = vsyncadd [#allocation3], 4294967040 }
 0x313   :  { %584 = vsyncpa [#allocation3], 1 }

</bundles_post_ra>
